<compile_context>
chip_gen: v6e
topology: v6e:2x2x1
jax: 0.10.0
libtpu: 0.0.40
codegen_flags: <defaults>
</compile_context>

<pallas_src>
import jax
import jax.numpy as jnp
from jax.experimental import pallas as pl
from jax.experimental.pallas import tpu as pltpu


def _round_up(x, m):
    return ((x + m - 1) // m) * m


def _cdiv(a, b):
    return -(-a // b)


def _tpu_vmem_capacity_bytes():
    """Per-TensorCore VMEM capacity; conservative 64 MiB fallback (v7x)."""
    try:
        info = pltpu.get_tpu_info()
        for name in ("vmem_capacity_bytes", "vmem_bytes", "vmem_capacity"):
            v = getattr(info, name, None)
            if v:
                return int(v)
    except Exception:
        pass
    return 64 << 20


# ----------------------------------------------------------------------------
# Kernels
# ----------------------------------------------------------------------------
def _expert_kernel_resident(x_ref, w1_ref, b1_ref, w2_ref, b2_ref, o_ref):
    """Single-step kernel: both full (padded) weight matrices live in VMEM."""
    h = jnp.dot(x_ref[...], w1_ref[...], preferred_element_type=jnp.float32)
    h = (h + b1_ref[...]).astype(w2_ref.dtype)           # full-rate MXU for fc2
    out = jnp.dot(h, w2_ref[...], preferred_element_type=jnp.float32) + b2_ref[...]
    o_ref[...] = out.astype(o_ref.dtype)


def _expert_kernel_stream_f32out(x_ref, w1_ref, b1_ref, w2_ref, b2_ref, o_ref):
    """k-streamed weights, f32 output: accumulate directly into the resident
    output block (no scratch)."""
    k = pl.program_id(1)
    h = jnp.dot(x_ref[...], w1_ref[...], preferred_element_type=jnp.float32)
    h = (h + b1_ref[...]).astype(w2_ref.dtype)
    part = jnp.dot(h, w2_ref[...], preferred_element_type=jnp.float32)

    @pl.when(k == 0)
    def _first():
        o_ref[...] = part + b2_ref[...]

    @pl.when(k != 0)
    def _rest():
        o_ref[...] += part


def _expert_kernel_stream_acc(x_ref, w1_ref, b1_ref, w2_ref, b2_ref, o_ref, acc_ref):
    """k-streamed weights, non-f32 output: f32 scratch accumulator, cast on the
    last k step."""
    k = pl.program_id(1)
    h = jnp.dot(x_ref[...], w1_ref[...], preferred_element_type=jnp.float32)
    h = (h + b1_ref[...]).astype(w2_ref.dtype)
    part = jnp.dot(h, w2_ref[...], preferred_element_type=jnp.float32)

    @pl.when(k == 0)
    def _first():
        acc_ref[...] = part

    @pl.when(k != 0)
    def _rest():
        acc_ref[...] += part

    @pl.when(k == pl.num_programs(1) - 1)
    def _finish():
        o_ref[...] = (acc_ref[...] + b2_ref[...]).astype(o_ref.dtype)


# ----------------------------------------------------------------------------
# Wrapper
# ----------------------------------------------------------------------------
def prepare_expert(w1, b1, w2, b2):
    """One-time weight transform (do this at init, NOT per forward call).

    w1: (hidden, in)  - PyTorch fc1.weight layout
    b1: (hidden,)
    w2: (in, hidden)  - PyTorch fc2.weight layout
    b2: (in,)
    Returns a dict of padded, transposed params consumed by expert_forward.
    """
    hidden, in_size = w1.shape
    assert w2.shape == (in_size, hidden)
    in_pad = _round_up(in_size, 128)
    hid_pad = _round_up(hidden, 128)
    w1t = jnp.pad(w1.T, ((0, in_pad - in_size), (0, hid_pad - hidden)))   # (in_pad, hid_pad)
    w2t = jnp.pad(w2.T, ((0, hid_pad - hidden), (0, in_pad - in_size)))   # (hid_pad, in_pad)
    b1p = jnp.pad(b1.astype(jnp.float32), (0, hid_pad - hidden)).reshape(1, hid_pad)
    b2p = jnp.pad(b2.astype(jnp.float32), (0, in_pad - in_size)).reshape(1, in_pad)
    return dict(w1t=w1t, w2t=w2t, b1p=b1p, b2p=b2p,
                in_size=in_size, hidden=hidden, in_pad=in_pad, hid_pad=hid_pad)


def expert_forward(x, params, *, tile_b=None, tile_k=None, force_stream=False,
                   vmem_cap_bytes=None):
    """Fused Expert forward: y = (x @ w1.T + b1) @ w2.T + b2."""
    w1t, w2t = params["w1t"], params["w2t"]
    b1p, b2p = params["b1p"], params["b2p"]
    in_size, hidden = params["in_size"], params["hidden"]
    in_pad, hid_pad = params["in_pad"], params["hid_pad"]

    B = x.shape[0]
    assert x.shape == (B, in_size)
    out_dtype = x.dtype

    # Match x to the weight dtype so BOTH matmuls run the full-rate MXU path
    # (f32 accumulation retained). Precision caveat: x is rounded once when
    # weights are bf16; intentional deviation from the f32 PyTorch reference.
    w_dtype = w1t.dtype
    if jnp.dtype(w_dtype).itemsize < jnp.dtype(x.dtype).itemsize:
        x = x.astype(w_dtype)

    xb = jnp.dtype(x.dtype).itemsize
    wb = jnp.dtype(w_dtype).itemsize
    ob = jnp.dtype(out_dtype).itemsize
    row_mult = 8 if xb >= 4 else 16                       # f32 vs packed sublanes

    vmem_cap = vmem_cap_bytes if vmem_cap_bytes is not None else _tpu_vmem_capacity_bytes()
    budget = int(vmem_cap * 0.85)                         # headroom for compiler scratch

    w_bytes = 2 * in_pad * hid_pad * wb                   # both weight matrices
    bias_bytes = (hid_pad + in_pad) * 4

    # Path selection: resident weights if their (double-buffered) footprint is
    # at most ~2/3 of the budget; otherwise stream k-slices.
    resident = (not force_stream) and (2 * (w_bytes + bias_bytes) <= (2 * budget) // 3)

    max_tile_b = 512

    def fit_tile_b(per_row_bytes, row_budget):
        tb = min(max_tile_b, _round_up(B, row_mult))
        tb = max(row_mult, (tb // row_mult) * row_mult)
        while tb > row_mult and tb * per_row_bytes > row_budget:
            tb -= row_mult
        return tb

    if resident:
        row_bytes = 2 * in_pad * (xb + ob)                # double-buffered x / out tiles
        remaining = budget - 2 * (w_bytes + bias_bytes)
        if tile_b is None:
            tile_b = fit_tile_b(row_bytes, max(remaining, row_mult * row_bytes))
        b_pad = _round_up(B, tile_b)
        grid = (b_pad // tile_b,)
        vmem_need = 2 * (w_bytes + bias_bytes) + tile_b * row_bytes
    else:
        # tile_k: largest multiple of 128 (<=512) dividing hid_pad whose
        # double-buffered W1/W2 slices stay within ~half the budget.
        if tile_k is None:
            w_slice_budget = budget // 2
            m = hid_pad // 128
            best = 1
            for d in range(m, 0, -1):
                if m % d == 0 and 128 * d <= 512 and 4 * in_pad * (128 * d) * wb <= w_slice_budget:
                    best = d
                    break
            tile_k = 128 * best
        else:
            tile_k = max(128, (tile_k // 128) * 128)
            while hid_pad % tile_k:
                tile_k -= 128
        acc_in_out = jnp.dtype(out_dtype) == jnp.float32
        row_bytes = 2 * in_pad * (xb + ob) + (0 if acc_in_out else in_pad * 4)
        w_stream_bytes = 4 * in_pad * tile_k * wb + 2 * tile_k * 4 + 2 * in_pad * 4
        remaining = budget - w_stream_bytes
        if tile_b is None:
            tile_b = fit_tile_b(row_bytes, max(remaining, row_mult * row_bytes))
        b_pad = _round_up(B, tile_b)
        grid = (b_pad // tile_b, hid_pad // tile_k)
        vmem_need = w_stream_bytes + tile_b * row_bytes

    vmem_limit = int(min(max(vmem_need + (8 << 20), 32 << 20), vmem_cap))

    # Zero-pad x (zeros are exact no-ops for this bias+matmul structure).
    if b_pad == B and in_pad == in_size:
        xp = x
    else:
        xp = jnp.pad(x, ((0, b_pad - B), (0, in_pad - in_size)))

    # Advisory cost estimate reflecting the actual HBM traffic of the path.
    n_btiles = b_pad // tile_b
    flops = 4 * b_pad * in_pad * hid_pad
    if resident:
        bytes_accessed = b_pad * in_pad * (xb + ob) + w_bytes + bias_bytes
    else:
        bytes_accessed = (b_pad * in_pad * (xb + ob)
                          + n_btiles * (w_bytes + hid_pad * 4) + in_pad * 4)
    cost = pl.CostEstimate(flops=flops, transcendentals=0, bytes_accessed=bytes_accessed)

    if resident:
        out_padded = pl.pallas_call(
            _expert_kernel_resident,
            out_shape=jax.ShapeDtypeStruct((b_pad, in_pad), out_dtype),
            grid_spec=pltpu.PrefetchScalarGridSpec(
                num_scalar_prefetch=0,
                grid=grid,
                in_specs=[
                    pl.BlockSpec((tile_b, in_pad), lambda i: (i, 0)),     # x tile
                    pl.BlockSpec((in_pad, hid_pad), lambda i: (0, 0)),    # W1^T (resident)
                    pl.BlockSpec((1, hid_pad), lambda i: (0, 0)),         # b1
                    pl.BlockSpec((hid_pad, in_pad), lambda i: (0, 0)),    # W2^T (resident)
                    pl.BlockSpec((1, in_pad), lambda i: (0, 0)),          # b2
                ],
                out_specs=pl.BlockSpec((tile_b, in_pad), lambda i: (i, 0)),
            ),
            compiler_params=pltpu.CompilerParams(
                dimension_semantics=("parallel",),
                vmem_limit_bytes=vmem_limit,
            ),
            cost_estimate=cost,
        )(xp, w1t, b1p, w2t, b2p)
    else:
        kernel = _expert_kernel_stream_f32out if acc_in_out else _expert_kernel_stream_acc
        scratch = [] if acc_in_out else [pltpu.VMEM((tile_b, in_pad), jnp.float32)]
        out_padded = pl.pallas_call(
            kernel,
            out_shape=jax.ShapeDtypeStruct((b_pad, in_pad), out_dtype),
            grid_spec=pltpu.PrefetchScalarGridSpec(
                num_scalar_prefetch=0,
                grid=grid,
                in_specs=[
                    pl.BlockSpec((tile_b, in_pad), lambda i, k: (i, 0)),  # x (resident across k)
                    pl.BlockSpec((in_pad, tile_k), lambda i, k: (0, k)),  # W1^T k-slice
                    pl.BlockSpec((1, tile_k), lambda i, k: (0, k)),       # b1 k-slice
                    pl.BlockSpec((tile_k, in_pad), lambda i, k: (k, 0)),  # W2^T k-slice
                    pl.BlockSpec((1, in_pad), lambda i, k: (0, 0)),       # b2 (constant block)
                ],
                out_specs=pl.BlockSpec((tile_b, in_pad), lambda i, k: (i, 0)),
                scratch_shapes=scratch,
            ),
            compiler_params=pltpu.CompilerParams(
                dimension_semantics=("parallel", "arbitrary"),
                vmem_limit_bytes=vmem_limit,
            ),
            cost_estimate=cost,
        )(xp, w1t, b1p, w2t, b2p)

    return out_padded[:B, :in_size]


def expert_apply(x, w1, b1, w2, b2, **kwargs):
    """One-shot convenience (re-prepares weights; prefer prepare_expert once at init)."""
    return expert_forward(x, prepare_expert(w1, b1, w2, b2), **kwargs)


# ----------------------------------------------------------------------------
# Self-test
# ----------------------------------------------------------------------------
if __name__ == "__main__":
    key = jax.random.PRNGKey(0)
    k1, k2, k3, k4 = jax.random.split(key, 4)

    # ---- Test 1: f32, module-default init, weights-resident fast path --------
    B, input_size, hidden_size = 8, 32, 64
    x = jax.random.normal(k1, (B, input_size), dtype=jnp.float32)
    w1 = 0.001 * jax.random.normal(k2, (hidden_size, input_size), dtype=jnp.float32)
    w2 = 0.001 * jax.random.normal(k3, (input_size, hidden_size), dtype=jnp.float32)
    b1 = jnp.zeros((hidden_size,), jnp.float32)
    b2 = jnp.zeros((input_size,), jnp.float32)

    prep = prepare_expert(w1, b1, w2, b2)          # one-time weight transform
    out = jax.block_until_ready(expert_forward(x, prep))
    ref = (x @ w1.T + b1) @ w2.T + b2
    assert out.shape == (B, input_size)
    assert jnp.allclose(out, ref, atol=1e-5, rtol=1e-5), "f32 resident path mismatch"

    # ---- Test 2: f32, forced k-streamed path (accumulate into output block) --
    B2, in2, hid2 = 64, 256, 512
    x2 = jax.random.normal(k4, (B2, in2), dtype=jnp.float32)
    w1b = 0.001 * jax.random.normal(k2, (hid2, in2), dtype=jnp.float32)
    w2b = 0.001 * jax.random.normal(k3, (in2, hid2), dtype=jnp.float32)
    b1b = 0.001 * jax.random.normal(k1, (hid2,), dtype=jnp.float32)
    b2b = 0.001 * jax.random.normal(k4, (in2,), dtype=jnp.float32)
    prep2 = prepare_expert(w1b, b1b, w2b, b2b)
    out2 = jax.block_until_ready(
        expert_forward(x2, prep2, force_stream=True, tile_k=128))
    ref2 = (x2 @ w1b.T + b1b) @ w2b.T + b2b
    assert jnp.allclose(out2, ref2, atol=2e-5, rtol=1e-3), "f32 streamed path mismatch"

    # ---- Test 3: bf16 weights + activations, streamed path with f32 scratch --
    xb16 = x2.astype(jnp.bfloat16)
    prep3 = prepare_expert(w1b.astype(jnp.bfloat16), b1b,
                           w2b.astype(jnp.bfloat16), b2b)
    out3 = jax.block_until_ready(
        expert_forward(xb16, prep3, force_stream=True, tile_k=128)).astype(jnp.float32)
    # Reference mirroring the kernel's bf16 rounding of the fc1 intermediate.
    xf = xb16.astype(jnp.float32)
    w1f = w1b.astype(jnp.bfloat16).astype(jnp.float32)
    w2f = w2b.astype(jnp.bfloat16).astype(jnp.float32)
    hmid = (xf @ w1f.T + b1b).astype(jnp.bfloat16).astype(jnp.float32)
    ref3 = hmid @ w2f.T + b2b
    assert jnp.allclose(out3, ref3, atol=5e-5, rtol=5e-2), "bf16 streamed path mismatch"

    print("KERNEL_OK")
</pallas_src>

<mosaic_0001>
module attributes {stable_mosaic.version = 11 : i64} {
  func.func @_expert_kernel_resident(%arg0: i32, %arg1: memref<8x128xf32, #tpu.memory_space<vmem>>, %arg2: memref<128x128xf32, #tpu.memory_space<vmem>>, %arg3: memref<1x128xf32, #tpu.memory_space<vmem>>, %arg4: memref<128x128xf32, #tpu.memory_space<vmem>>, %arg5: memref<1x128xf32, #tpu.memory_space<vmem>>, %arg6: memref<8x128xf32, #tpu.memory_space<vmem>>) attributes {dimension_semantics = [#tpu.dimension_semantics<parallel>], iteration_bounds = array<i64: 1>, scalar_prefetch = 0 : i64, scratch_operands = 0 : i64, tpu.core_type = #tpu.core_type<tc>, window_params = [{transform_indices = @transform_0, window_bounds = array<i64: 8, 128>}, {pipeline_mode = #tpu.pipeline_mode<synchronous>, transform_indices = @transform_1, window_bounds = array<i64: 128, 128>}, {pipeline_mode = #tpu.pipeline_mode<synchronous>, transform_indices = @transform_2, window_bounds = array<i64: 1, 128>}, {pipeline_mode = #tpu.pipeline_mode<synchronous>, transform_indices = @transform_3, window_bounds = array<i64: 128, 128>}, {pipeline_mode = #tpu.pipeline_mode<synchronous>, transform_indices = @transform_4, window_bounds = array<i64: 1, 128>}, {transform_indices = @transform_5, window_bounds = array<i64: 8, 128>}]} {
    %c0 = arith.constant 0 : index
    %c0_0 = arith.constant 0 : index
    %0 = vector.load %arg1[%c0, %c0_0] : memref<8x128xf32, #tpu.memory_space<vmem>>, vector<8x128xf32>
    %c0_1 = arith.constant 0 : index
    %c0_2 = arith.constant 0 : index
    %1 = vector.load %arg2[%c0_1, %c0_2] : memref<128x128xf32, #tpu.memory_space<vmem>>, vector<128x128xf32>
    %cst = arith.constant dense<0.000000e+00> : vector<8x128xf32>
    %2 = tpu.matmul %0, %1, %cst {dimension_numbers = #tpu.dot_dimension_numbers<[1], [0], [0], [1], [0, 0, 1, 1], [], []>} : vector<8x128xf32>, vector<128x128xf32>, vector<8x128xf32> -> vector<8x128xf32>
    %c0_3 = arith.constant 0 : index
    %c0_4 = arith.constant 0 : index
    %3 = vector.load %arg3[%c0_3, %c0_4] : memref<1x128xf32, #tpu.memory_space<vmem>>, vector<1x128xf32>
    %4 = vector.broadcast %3 : vector<1x128xf32> to vector<8x128xf32>
    %5 = arith.addf %2, %4 : vector<8x128xf32>
    %c0_5 = arith.constant 0 : index
    %c0_6 = arith.constant 0 : index
    %6 = vector.load %arg4[%c0_5, %c0_6] : memref<128x128xf32, #tpu.memory_space<vmem>>, vector<128x128xf32>
    %cst_7 = arith.constant dense<0.000000e+00> : vector<8x128xf32>
    %7 = tpu.matmul %5, %6, %cst_7 {dimension_numbers = #tpu.dot_dimension_numbers<[1], [0], [0], [1], [0, 0, 1, 1], [], []>} : vector<8x128xf32>, vector<128x128xf32>, vector<8x128xf32> -> vector<8x128xf32>
    %c0_8 = arith.constant 0 : index
    %c0_9 = arith.constant 0 : index
    %8 = vector.load %arg5[%c0_8, %c0_9] : memref<1x128xf32, #tpu.memory_space<vmem>>, vector<1x128xf32>
    %9 = vector.broadcast %8 : vector<1x128xf32> to vector<8x128xf32>
    %10 = arith.addf %7, %9 : vector<8x128xf32>
    %c0_10 = arith.constant 0 : index
    %c0_11 = arith.constant 0 : index
    %11 = vector.load %arg6[%c0_10, %c0_11] : memref<8x128xf32, #tpu.memory_space<vmem>>, vector<8x128xf32>
    tpu.vector_store %arg6[%c0_10, %c0_11], %10 {strides = array<i32>} : memref<8x128xf32, #tpu.memory_space<vmem>>, vector<8x128xf32>,
    return
  }
  func.func @transform_0(%arg0: i32) -> (i32, i32) {
    %c0_i32 = arith.constant 0 : i32
    %c0_i32_0 = arith.constant 0 : i32
    return %arg0, %c0_i32 : i32, i32
  }
  func.func @transform_1(%arg0: i32) -> (i32, i32) {
    %c0_i32 = arith.constant 0 : i32
    %c0_i32_0 = arith.constant 0 : i32
    %c0_i32_1 = arith.constant 0 : i32
    return %c0_i32, %c0_i32_0 : i32, i32
  }
  func.func @transform_2(%arg0: i32) -> (i32, i32) {
    %c0_i32 = arith.constant 0 : i32
    %c0_i32_0 = arith.constant 0 : i32
    %c0_i32_1 = arith.constant 0 : i32
    return %c0_i32, %c0_i32_0 : i32, i32
  }
  func.func @transform_3(%arg0: i32) -> (i32, i32) {
    %c0_i32 = arith.constant 0 : i32
    %c0_i32_0 = arith.constant 0 : i32
    %c0_i32_1 = arith.constant 0 : i32
    return %c0_i32, %c0_i32_0 : i32, i32
  }
  func.func @transform_4(%arg0: i32) -> (i32, i32) {
    %c0_i32 = arith.constant 0 : i32
    %c0_i32_0 = arith.constant 0 : i32
    %c0_i32_1 = arith.constant 0 : i32
    return %c0_i32, %c0_i32_0 : i32, i32
  }
  func.func @transform_5(%arg0: i32) -> (i32, i32) {
    %c0_i32 = arith.constant 0 : i32
    %c0_i32_0 = arith.constant 0 : i32
    return %arg0, %c0_i32 : i32, i32
  }
}

</mosaic_0001>

<bundles_post_ra>
// kernel: tpu_custom_call.1
= control target key start
LH: loop header
LB: loop body
LE: loop exit
PB: predicated region body
PF: predicated region fallthrough
CT: control target
= control target key end

     0   :  { %10 = vsyncpa [#allocation3], 0  ;;  %s554_s0 = inlined_call_operand.hbm [shape: f32[8,128], index: 0, kind: input, shape index: {}]   ;;  %s555_s1 = inlined_call_operand.hbm [shape: f32[128,128], index: 1, kind: input, shape index: {}]   ;;  %s556_s2 = inlined_call_operand.vmem [shape: f32[1,128], index: 2, kind: input, shape index: {}]   ;;  %s557_s3 = inlined_call_operand.hbm [shape: f32[128,128], index: 3, kind: input, shape index: {}]   ;;  %s558_s4 = inlined_call_operand.vmem [shape: f32[1,128], index: 4, kind: input, shape index: {}]   ;;  %s559_s5 = inlined_call_operand.hbm [shape: f32[8,128], index: 5, kind: output, shape index: {}]  }
   0x1   :  { %11 = vsyncpa [#allocation6], 0 }
   0x2   :  { %12 = vsyncpa [#allocation4], 0  ;;  %s464_s18 = smov [#allocation5]  }
   0x3   :  { %s28_s19 = sshll.u32 %s464_s18, 4  ;;  %s29_s19 = int_to_ptr.vmem [resolvable:$true] %s28_s19 }
   0x4   :  { %s386_s20 = scalar_lea.vmem %s29_s19, 2048  ;;  %p391_p1 = scmp.lt.s32.totalorder %s29_s19, %s29_s19 }
   0x5   :  { %p387_p0 = scmp.ne.s32.totalorder %s29_s19, %s386_s20  ;;  %p392_p2 = scmp.lt.s32.totalorder %s386_s20, %s386_s20 }
   0x7   :  { %p393_p3 = por %p392_p2, %p391_p1 }
   0x9   :  { %p394_p4 = pnand %p393_p3, %p387_p0 }
   0xb   :  { %397 = shalt.err (!%p394_p4)
}
   0xc   :  { %s465_s21 = smov 128   ;;  %s466_s22 = smov 8  }
   0xd   :  { %34 = dma.hbm_to_vmem [thread:$0]  %s555_s1, 2048, %s29_s19, [#allocation6], %s465_s21, %s465_s21, %s466_s22  }
   0xe   :  { %s467_s25 = smov [#allocation2]   ;;  %s468_s27 = smov [#allocation7]  }
   0xf   :  { %s19_s26 = sshll.u32 %s467_s25, 4  ;;  %s42_s28 = sshll.u32 %s468_s27, 4  ;;  %s20_s26 = int_to_ptr.vmem [resolvable:$true] %s19_s26  ;;  %s43_s28 = int_to_ptr.vmem [resolvable:$true] %s42_s28 }
  0x10   :  { %s406_s29 = scalar_lea.vmem %s20_s26, 128  ;;  %p411_p6 = scmp.lt.s32.totalorder %s20_s26, %s20_s26 }
  0x11   :  { %p407_p5 = scmp.ne.s32.totalorder %s20_s26, %s406_s29  ;;  %p412_p7 = scmp.lt.s32.totalorder %s406_s29, %s406_s29 }
  0x13   :  { %p413_p8 = por %p412_p7, %p411_p6 }
  0x15   :  { %p414_p9 = pnand %p413_p8, %p407_p5 }
  0x17   :  { %417 = shalt.err (!%p414_p9)
}
  0x18   :  { %22 = dma.hbm_to_vmem [thread:$0]  %s554_s0, 128, %s20_s26, [#allocation3]  }
  0x19   :  { %s426_s7 = scalar_lea.vmem %s43_s28, 2048  ;;  %p431_p11 = scmp.lt.s32.totalorder %s43_s28, %s43_s28 }
  0x1a   :  { %p427_p10 = scmp.ne.s32.totalorder %s43_s28, %s426_s7  ;;  %p432_p12 = scmp.lt.s32.totalorder %s426_s7, %s426_s7 }
  0x1c   :  { %p433_p13 = por %p432_p12, %p431_p11 }
  0x1e   :  { %p434_p0 = pnand %p433_p13, %p427_p10 }
  0x20   :  { %437 = shalt.err (!%p434_p0)
}
  0x21   :  { %48 = dma.hbm_to_vmem [thread:$0]  %s557_s3, 2048, %s43_s28, [#allocation6], %s465_s21, %s465_s21, %s466_s22  }
  0x22   :  { %458 = dma.done.wait [#allocation3], 128  }
  0x23   :  { %459 = vsyncadd [#allocation3], 4294967168 }
  0x24   :  { %460 = dma.done.wait [#allocation6], 4096  }
  0x25   :  { %461 = vsyncadd [#allocation6], 4294963200  ;;  %v469_v0 = vmov 0.0   ;;  %vm470_vm0 = vmmov 0   ;;  %v76_v1 = vld [vmem:[#allocation5 + $0x78] sm:$0xff]  ;;  %v75_v2 = vld [vmem:[#allocation5 + $0x70] sm:$0xff] }
  0x26   :  { %300 = vmatprep.subr.mxu0 %v469_v0  ;;  %332 = vmatprep.mubr.msk.f32.mxu0 %vm470_vm0, %v469_v0  ;;  %v74_v3 = vld [vmem:[#allocation5 + $0x68] sm:$0xff]  ;;  %v73_v4 = vld [vmem:[#allocation5 + $0x60] sm:$0xff]  ;;  %v169_v5 = vld [vmem:[#allocation7 + $0x78] sm:$0xff]  ;;  %s471_s11 = smov [#allocation8]  }
  0x27   :  { %335 = vmatprep.subr.mxu1 %v469_v0  ;;  %367 = vmatprep.mubr.msk.f32.mxu1 %vm470_vm0, %v469_v0  ;;  %v72_v6 = vld [vmem:[#allocation5 + $0x58] sm:$0xff]  ;;  %v168_v7 = vld [vmem:[#allocation7 + $0x70] sm:$0xff]  ;;  %v167_v8 = vld [vmem:[#allocation7 + $0x68] sm:$0xff]  ;;  %s254_s12 = sshll.u32 %s471_s11, 4  ;;  %s255_s12 = int_to_ptr.vmem [resolvable:$true] %s254_s12 }
  0x28   :  { %301 = vmatpush3.msra.mxu0 %v76_v1  ;;  %336 = vmatpush3.msra.mxu1 %v169_v5  ;;  %v71_v9 = vld [vmem:[#allocation5 + $0x50] sm:$0xff]  ;;  %v166_v10 = vld [vmem:[#allocation7 + $0x60] sm:$0xff]  ;;  %v70_v11 = vld [vmem:[#allocation5 + $0x48] sm:$0xff]  ;;  %s438_s13 = scalar_lea.vmem %s255_s12, 128  ;;  %p443_p2 = scmp.lt.s32.totalorder %s255_s12, %s255_s12 }
  0x29   :  { %302 = vmatprep.subr.mxu0 %v469_v0  ;;  %337 = vmatprep.subr.mxu1 %v469_v0  ;;  %v165_v12 = vld [vmem:[#allocation7 + $0x58] sm:$0xff]  ;;  %v69_v13 = vld [vmem:[#allocation5 + $0x40] sm:$0xff]  ;;  %v164_v14 = vld [vmem:[#allocation7 + $0x50] sm:$0xff]  ;;  %p439_p1 = scmp.ne.s32.totalorder %s255_s12, %s438_s13  ;;  %p444_p3 = scmp.lt.s32.totalorder %s438_s13, %s438_s13 }
  0x2a   :  { %303 = vmatpush3.msra.mxu0 %v75_v2  ;;  %338 = vmatpush3.msra.mxu1 %v168_v7  ;;  %v68_v15 = vld [vmem:[#allocation5 + $0x38] sm:$0xff]  ;;  %v163_v16 = vld [vmem:[#allocation7 + $0x48] sm:$0xff]  ;;  %v67_v17 = vld [vmem:[#allocation5 + $0x30] sm:$0xff] }
  0x2b   :  { %304 = vmatprep.subr.mxu0 %v469_v0  ;;  %339 = vmatprep.subr.mxu1 %v469_v0  ;;  %v162_v18 = vld [vmem:[#allocation7 + $0x40] sm:$0xff]  ;;  %v66_v19 = vld [vmem:[#allocation5 + $0x28] sm:$0xff]  ;;  %v161_v20 = vld [vmem:[#allocation7 + $0x38] sm:$0xff]  ;;  %p445_p4 = por %p444_p3, %p443_p2 }
  0x2c   :  { %305 = vmatpush3.msra.mxu0 %v74_v3  ;;  %340 = vmatpush3.msra.mxu1 %v167_v8  ;;  %v65_v21 = vld [vmem:[#allocation5 + $0x20] sm:$0xff]  ;;  %v160_v22 = vld [vmem:[#allocation7 + $0x30] sm:$0xff]  ;;  %v64_v23 = vld [vmem:[#allocation5 + $0x18] sm:$0xff] }
  0x2d   :  { %306 = vmatprep.subr.mxu0 %v469_v0  ;;  %341 = vmatprep.subr.mxu1 %v469_v0  ;;  %v159_v24 = vld [vmem:[#allocation7 + $0x28] sm:$0xff]  ;;  %v63_v25 = vld [vmem:[#allocation5 + $0x10] sm:$0xff]  ;;  %v158_v26 = vld [vmem:[#allocation7 + $0x20] sm:$0xff]  ;;  %p446_p5 = pnand %p445_p4, %p439_p1 }
  0x2e   :  { %307 = vmatpush3.msra.mxu0 %v73_v4  ;;  %342 = vmatpush3.msra.mxu1 %v166_v10  ;;  %v62_v27 = vld [vmem:[#allocation5 + $0x8] sm:$0xff]  ;;  %v157_v28 = vld [vmem:[#allocation7 + $0x18] sm:$0xff]  ;;  %v61_v29 = vld [vmem:[#allocation5] sm:$0xff] }
  0x2f   :  { %308 = vmatprep.subr.mxu0 %v469_v0  ;;  %343 = vmatprep.subr.mxu1 %v469_v0  ;;  %v60_v30 = vld [vmem:[#allocation2] sm:$0xff]  ;;  %v156_v31 = vld [vmem:[#allocation7 + $0x10] sm:$0xff]  ;;  %v155_v32 = vld [vmem:[#allocation7 + $0x8] sm:$0xff] }
  0x30   :  { %309 = vmatpush3.msra.mxu0 %v72_v6  ;;  %344 = vmatpush3.msra.mxu1 %v165_v12  ;;  %v154_v33 = vld [vmem:[#allocation7] sm:$0xff]  ;;  %v264_v34 = vld [vmem:[%s556_s2] ss:$0 sm:$0xff] }
  0x31   :  { %310 = vmatprep.subr.mxu0 %v469_v0  ;;  %345 = vmatprep.subr.mxu1 %v469_v0  ;;  %v265_v38 = vld [vmem:[%s558_s4] ss:$0 sm:$0xff] }
  0x32   :  { %311 = vmatpush3.msra.mxu0 %v71_v9  ;;  %346 = vmatpush3.msra.mxu1 %v164_v14 }
  0x33   :  { %312 = vmatprep.subr.mxu0 %v469_v0  ;;  %347 = vmatprep.subr.mxu1 %v469_v0 }
  0x34   :  { %313 = vmatpush3.msra.mxu0 %v70_v11  ;;  %348 = vmatpush3.msra.mxu1 %v163_v16 }
  0x35   :  { %314 = vmatprep.subr.mxu0 %v469_v0  ;;  %349 = vmatprep.subr.mxu1 %v469_v0 }
  0x36   :  { %315 = vmatpush3.msra.mxu0 %v69_v13  ;;  %350 = vmatpush3.msra.mxu1 %v162_v18 }
  0x37   :  { %316 = vmatprep.subr.mxu0 %v469_v0  ;;  %351 = vmatprep.subr.mxu1 %v469_v0 }
  0x38   :  { %317 = vmatpush3.msra.mxu0 %v68_v15  ;;  %352 = vmatpush3.msra.mxu1 %v161_v20 }
  0x39   :  { %318 = vmatprep.subr.mxu0 %v469_v0  ;;  %353 = vmatprep.subr.mxu1 %v469_v0 }
  0x3a   :  { %319 = vmatpush3.msra.mxu0 %v67_v17  ;;  %354 = vmatpush3.msra.mxu1 %v160_v22 }
  0x3b   :  { %320 = vmatprep.subr.mxu0 %v469_v0  ;;  %355 = vmatprep.subr.mxu1 %v469_v0 }
  0x3c   :  { %321 = vmatpush3.msra.mxu0 %v66_v19  ;;  %356 = vmatpush3.msra.mxu1 %v159_v24 }
  0x3d   :  { %322 = vmatprep.subr.mxu0 %v469_v0  ;;  %357 = vmatprep.subr.mxu1 %v469_v0 }
  0x3e   :  { %323 = vmatpush3.msra.mxu0 %v65_v21  ;;  %358 = vmatpush3.msra.mxu1 %v158_v26 }
  0x3f   :  { %324 = vmatprep.subr.mxu0 %v469_v0  ;;  %359 = vmatprep.subr.mxu1 %v469_v0 }
  0x40   :  { %325 = vmatpush3.msra.mxu0 %v64_v23  ;;  %360 = vmatpush3.msra.mxu1 %v157_v28 }
  0x41   :  { %326 = vmatprep.subr.mxu0 %v469_v0  ;;  %361 = vmatprep.subr.mxu1 %v469_v0 }
  0x42   :  { %327 = vmatpush3.msra.mxu0 %v63_v25  ;;  %362 = vmatpush3.msra.mxu1 %v156_v31 }
  0x43   :  { %328 = vmatprep.subr.mxu0 %v469_v0  ;;  %363 = vmatprep.subr.mxu1 %v469_v0 }
  0x44   :  { %329 = vmatpush3.msra.mxu0 %v62_v27  ;;  %364 = vmatpush3.msra.mxu1 %v155_v32 }
  0x45   :  { %330 = vmatprep.subr.mxu0 %v469_v0  ;;  %365 = vmatprep.subr.mxu1 %v469_v0 }
  0x46   :  { %331 = vmatpush3.msra.mxu0 %v61_v29  ;;  %366 = vmatpush3.msra.mxu1 %v154_v33 }
  0x47   :  { %333 = vmatmul.mubr.f32.vlgmr.msra.gmra.mxu0 %v60_v30 }
 0x107   :  { %v150_v35 = vpop.f32.mrf.mxu0 }
 0x108   :  { %v151_v36 = vadd.f32 %v264_v34, %v150_v35 }
 0x109   :  { %v334_v37 = vpop.f32.mrf.mxu0 }
 0x10a   :  { %368 = vmatmul.mubr.f32.vlgmr.msra.gmra.mxu1 %v151_v36 }
 0x1ca   :  { %v243_v39 = vpop.f32.mrf.mxu1 }
 0x1cb   :  { %v244_v40 = vadd.f32 %v265_v38, %v243_v39 }
 0x1cc   :  { %v369_v41 = vpop.f32.mrf.mxu1 }
 0x1cd   :  { %247 = vst [vmem:[#allocation8] sm:$0xff] %v244_v40 }
 0x1ce   :  { %449 = shalt.err (!%p446_p5)
}
 0x1cf   :  { %257 = dma.vmem_to_hbm [thread:$0]  %s255_s12, 128, %s559_s5, [#allocation4]  }
 0x1d0   :  { %462 = dma.done.wait [#allocation4], 128  }
 0x1d1   :  { %463 = vsyncadd [#allocation4], 4294967168 }
 0x1d2   :  { %261 = vsyncpa [#allocation3], 1 }
 0x1d3   :  { %262 = vsyncpa [#allocation6], 1 }
 0x1d4   :  { %263 = vsyncpa [#allocation4], 1 }

</bundles_post_ra>
